<compile_context>
chip_gen: v7x
topology: tpu7x:2x2x1
jax: 0.10.0
libtpu: 0.0.40
codegen_flags: <defaults>
</compile_context>

<pallas_src>
import jax
import jax.numpy as jnp
from jax.experimental import pallas as pl
from jax.experimental.pallas import tpu as pltpu


def _round_up(a: int, b: int) -> int:
    return ((a + b - 1) // b) * b


def _packed_linear_relu_kernel(xp_ref, wbd_ref, b_ref, op_ref):
    # xp_ref : (tile_pr, P*n_ant)    packed input rows (lane-dense for P=32)
    # wbd_ref: (P*n_ant, P*d_model)  block-diag kron(I_P, W.T), grid-resident
    # b_ref  : (1, P*d_model)        tiled bias, grid-resident
    # op_ref : (tile_pr, P*d_model)  packed output rows, lane-dense stores
    y = jnp.dot(xp_ref[...], wbd_ref[...], preferred_element_type=jnp.float32)
    y = y + b_ref[...]                                  # broadcast over sublanes
    op_ref[...] = jnp.maximum(y, 0.0).astype(op_ref.dtype)   # ReLU


def input_embeddings_forward(x, weight, bias):
    """relu(x @ weight.T + bias); dropout = identity (eval mode).

    x:      (batch, seq, n_ant) float32
    weight: (d_model, n_ant)    -- PyTorch nn.Linear weight layout
    bias:   (d_model,)
    returns (batch, seq, d_model)
    """
    batch, seq, n_ant = x.shape
    d_model = weight.shape[0]
    rows = batch * seq

    # --- choose row-packing factor P (prefer no padding at all) -------------
    P = 32
    if rows % P != 0:
        for cand in (16, 8, 4):
            if rows % cand == 0:
                P = cand
                break
        else:
            P = 32  # fall back: pad at most 31 rows (tiny vs. output traffic)
    pad_rows = (-rows) % P
    rows_p = rows + pad_rows
    packed_rows = rows_p // P

    # --- free contiguous reshapes (no transpose, no full-array pad) ---------
    x2d = x.reshape(rows, n_ant)
    if pad_rows:
        x2d = jnp.pad(x2d, ((0, pad_rows), (0, 0)))
    xp = x2d.reshape(packed_rows, P * n_ant)

    # Block-diagonal weight (built once, a few hundred KB) and tiled bias.
    w_bd = jnp.kron(jnp.eye(P, dtype=weight.dtype), weight.T)   # (P*n_ant, P*d_model)
    b_tiled = jnp.tile(bias, P).reshape(1, P * d_model)         # (1, P*d_model)

    # --- tile selection ------------------------------------------------------
    out_row_bytes = P * d_model * jnp.dtype(x.dtype).itemsize
    if packed_rows <= 8:
        tile_pr = packed_rows                       # single full block
    else:
        # ~4 MiB of output per grid step keeps the HBM pipe saturated.
        tile_pr = max(8, (4 * 1024 * 1024) // out_row_bytes)
        # Keep >= 2 grid steps so both v7x TensorCores get work.
        tile_pr = min(tile_pr, _round_up(-(-packed_rows // 2), 8))
        tile_pr = _round_up(tile_pr, 8)

    grid = (pl.cdiv(packed_rows, tile_pr),)

    out_p = pl.pallas_call(
        _packed_linear_relu_kernel,
        out_shape=jax.ShapeDtypeStruct((packed_rows, P * d_model), x.dtype),
        grid_spec=pltpu.PrefetchScalarGridSpec(
            num_scalar_prefetch=0,
            grid=grid,
            in_specs=[
                pl.BlockSpec((tile_pr, P * n_ant), lambda i: (i, 0)),       # xp tile
                pl.BlockSpec((P * n_ant, P * d_model), lambda i: (0, 0)),   # W_bd (resident)
                pl.BlockSpec((1, P * d_model), lambda i: (0, 0)),           # bias (resident)
            ],
            out_specs=pl.BlockSpec((tile_pr, P * d_model), lambda i: (i, 0)),
        ),
        compiler_params=pltpu.CompilerParams(
            dimension_semantics=("parallel",),   # no reduction axis; shards on v7x
        ),
    )(xp, w_bd, b_tiled)

    # Contiguous unpack (no-op reshape); slice is only non-trivial if we padded.
    out2d = out_p.reshape(rows_p, d_model)
    if pad_rows:
        out2d = out2d[:rows]
    return out2d.reshape(batch, seq, d_model)


if __name__ == "__main__":
    # Small shapes consistent with the module: batch=2, seq=8, n_ant=4, d_model=32
    batch, seq, n_ant, d_model = 2, 8, 4, 32

    key = jax.random.PRNGKey(0)
    kx, kw, kb = jax.random.split(key, 3)

    x = jax.random.normal(kx, (batch, seq, n_ant), dtype=jnp.float32)

    # nn.Linear-style init: uniform(-1/sqrt(in_features), 1/sqrt(in_features)).
    bound = 1.0 / jnp.sqrt(jnp.float32(n_ant))
    weight = jax.random.uniform(kw, (d_model, n_ant), jnp.float32, -bound, bound)
    bias = jax.random.uniform(kb, (d_model,), jnp.float32, -bound, bound)

    # TODO(synk): Dropout(p=0.1) is omitted (identity at inference/eval time);
    # training-mode dropout would need pltpu.prng_seed / prng_random_bits masking.

    out = input_embeddings_forward(x, weight, bias)
    jax.block_until_ready(out)

    # Correctness check against plain JAX reference.
    ref = jnp.maximum(x @ weight.T + bias, 0.0)
    assert out.shape == (batch, seq, d_model)
    assert jnp.allclose(out, ref, atol=1e-4, rtol=1e-4)

    print("KERNEL_OK")
</pallas_src>

<mosaic_0001>
module attributes {stable_mosaic.version = 11 : i64} {
  func.func @_packed_linear_relu_kernel(%arg0: i32, %arg1: memref<1x64xf32, #tpu.memory_space<vmem>>, %arg2: memref<64x512xf32, #tpu.memory_space<vmem>>, %arg3: memref<1x512xf32, #tpu.memory_space<vmem>>, %arg4: memref<1x512xf32, #tpu.memory_space<vmem>>) attributes {dimension_semantics = [#tpu.dimension_semantics<parallel>], iteration_bounds = array<i64: 1>, scalar_prefetch = 0 : i64, scratch_operands = 0 : i64, tpu.core_type = #tpu.core_type<tc>, window_params = [{transform_indices = @transform_0, window_bounds = array<i64: 1, 64>}, {pipeline_mode = #tpu.pipeline_mode<synchronous>, transform_indices = @transform_1, window_bounds = array<i64: 64, 512>}, {pipeline_mode = #tpu.pipeline_mode<synchronous>, transform_indices = @transform_2, window_bounds = array<i64: 1, 512>}, {transform_indices = @transform_3, window_bounds = array<i64: 1, 512>}]} {
    %c0 = arith.constant 0 : index
    %c0_0 = arith.constant 0 : index
    %0 = vector.load %arg1[%c0, %c0_0] : memref<1x64xf32, #tpu.memory_space<vmem>>, vector<1x64xf32>
    %c0_1 = arith.constant 0 : index
    %c0_2 = arith.constant 0 : index
    %1 = vector.load %arg2[%c0_1, %c0_2] : memref<64x512xf32, #tpu.memory_space<vmem>>, vector<64x512xf32>
    %cst = arith.constant dense<0.000000e+00> : vector<1x512xf32>
    %2 = tpu.matmul %0, %1, %cst {dimension_numbers = #tpu.dot_dimension_numbers<[1], [0], [0], [1], [0, 0, 1, 1], [], []>} : vector<1x64xf32>, vector<64x512xf32>, vector<1x512xf32> -> vector<1x512xf32>
    %c0_3 = arith.constant 0 : index
    %c0_4 = arith.constant 0 : index
    %3 = vector.load %arg3[%c0_3, %c0_4] : memref<1x512xf32, #tpu.memory_space<vmem>>, vector<1x512xf32>
    %4 = arith.addf %2, %3 : vector<1x512xf32>
    %cst_5 = arith.constant 0.000000e+00 : f32
    %5 = vector.broadcast %cst_5 : f32 to vector<1x512xf32>
    %6 = arith.maximumf %4, %5 : vector<1x512xf32>
    %c0_6 = arith.constant 0 : index
    %c0_7 = arith.constant 0 : index
    %7 = vector.load %arg4[%c0_6, %c0_7] : memref<1x512xf32, #tpu.memory_space<vmem>>, vector<1x512xf32>
    tpu.vector_store %arg4[%c0_6, %c0_7], %6 {strides = array<i32>} : memref<1x512xf32, #tpu.memory_space<vmem>>, vector<1x512xf32>,
    return
  }
  func.func @transform_0(%arg0: i32) -> (i32, i32) {
    %c0_i32 = arith.constant 0 : i32
    %c0_i32_0 = arith.constant 0 : i32
    return %arg0, %c0_i32 : i32, i32
  }
  func.func @transform_1(%arg0: i32) -> (i32, i32) {
    %c0_i32 = arith.constant 0 : i32
    %c0_i32_0 = arith.constant 0 : i32
    %c0_i32_1 = arith.constant 0 : i32
    return %c0_i32, %c0_i32_0 : i32, i32
  }
  func.func @transform_2(%arg0: i32) -> (i32, i32) {
    %c0_i32 = arith.constant 0 : i32
    %c0_i32_0 = arith.constant 0 : i32
    %c0_i32_1 = arith.constant 0 : i32
    return %c0_i32, %c0_i32_0 : i32, i32
  }
  func.func @transform_3(%arg0: i32) -> (i32, i32) {
    %c0_i32 = arith.constant 0 : i32
    %c0_i32_0 = arith.constant 0 : i32
    return %arg0, %c0_i32 : i32, i32
  }
}

</mosaic_0001>

<bundles_post_ra>
// kernel: tpu_custom_call.1
= control target key start
LH: loop header
LB: loop body
LE: loop exit
PB: predicated region body
PF: predicated region fallthrough
CT: control target
= control target key end

     0   :  { %8 = vsyncpa [#allocation3], 0  ;;  %s482_s0 = inlined_call_operand.hbm [shape: f32[1,64], index: 0, kind: input, shape index: {}]   ;;  %s483_s1 = inlined_call_operand.hbm [shape: f32[64,512], index: 1, kind: input, shape index: {}]   ;;  %s484_s2 = inlined_call_operand.vmem [shape: f32[1,512], index: 2, kind: input, shape index: {}]   ;;  %s485_s3 = inlined_call_operand.hbm [shape: f32[1,512], index: 3, kind: output, shape index: {}]  }
   0x1   :  { %9 = vsyncpa [#allocation6], 0 }
   0x2   :  { %10 = vsyncpa [#allocation4], 0  ;;  %s409_s12 = smov [#allocation2]   ;;  %s410_s14 = smov [#allocation5]  }
   0x3   :  { %s17_s13 = sshll.u32 %s409_s12, 4  ;;  %s26_s15 = sshll.u32 %s410_s14, 4  ;;  %s18_s13 = int_to_ptr.vmem [resolvable:$true] %s17_s13  ;;  %s436_s15 = int_to_ptr.vmem [resolvable:$true] %s26_s15 }
   0x4   :  { %s337_s18 = scalar_lea.hbm %s482_s0, 16 }
   0x5   :  { %p338_p0 = scmp.ne.s32.totalorder %s482_s0, %s337_s18  ;;  %p341_p1 = scmp.lt.u32.totalorder %s337_s18, %s482_s0 }
   0x7   :  { %p343_p2 = pnand %p341_p1, %p338_p0 }
   0x9   :  { %346 = shalt.err (!%p343_p2)
}
   0xa   :  { %s347_s23 = scalar_lea.vmem %s18_s13, 16  ;;  %s351_s24 = scalar_lea.vmem %s18_s13, 32 }
   0xb   :  { %p348_p3 = scmp.ne.s32.totalorder %s18_s13, %s347_s23  ;;  %p352_p4 = scmp.lt.s32.totalorder %s18_s13, %s18_s13 }
   0xc   :  { %p353_p5 = scmp.lt.s32.totalorder %s351_s24, %s347_s23 }
   0xe   :  { %p354_p6 = por %p353_p5, %p352_p4 }
  0x10   :  { %p355_p7 = pnand %p354_p6, %p348_p3 }
  0x12   :  { %358 = shalt.err (!%p355_p7)
}
  0x13   :  { %20 = dma.hbm_to_vmem [thread:$0]  %s482_s0, 16, %s18_s13, [#allocation3]  }
  0x14   :  { %s359_s29 = scalar_lea.hbm %s483_s1, 4096 }
  0x15   :  { %p360_p8 = scmp.ne.s32.totalorder %s483_s1, %s359_s29  ;;  %p363_p9 = scmp.lt.u32.totalorder %s359_s29, %s483_s1 }
  0x17   :  { %p365_p10 = pnand %p363_p9, %p360_p8 }
  0x19   :  { %368 = shalt.err (!%p365_p10)
}
  0x1a   :  { %s369_s7 = scalar_lea.vmem %s436_s15, 4096  ;;  %p374_p12 = scmp.lt.s32.totalorder %s436_s15, %s436_s15 }
  0x1b   :  { %p370_p11 = scmp.ne.s32.totalorder %s436_s15, %s369_s7  ;;  %p375_p13 = scmp.lt.s32.totalorder %s369_s7, %s369_s7 }
  0x1d   :  { %p376_p0 = por %p375_p13, %p374_p12 }
  0x1f   :  { %p377_p1 = pnand %p376_p0, %p370_p11 }
  0x21   :  { %380 = shalt.err (!%p377_p1)
}
  0x22   :  { %s411_s0 = smov 512   ;;  %s412_s8 = smov 32  }
  0x23   :  { %32 = dma.hbm_to_vmem [thread:$0]  %s483_s1, 4096, %s436_s15, [#allocation6], %s411_s0, %s411_s0, %s412_s8  }
  0x24   :  { %403 = dma.done.wait [#allocation3], 16  }
  0x25   :  { %404 = vsyncadd [#allocation3], 4294967280 }
  0x26   :  { %405 = dma.done.wait [#allocation6], 4096  }
  0x27   :  { %406 = vsyncadd [#allocation6], 4294963200  ;;  %v413_v0 = vmov 0.0   ;;  %v43_v1 = vld [vmem:[#allocation5 + $0x8] sm:$0xff]  ;;  %v45_v3 = vld [vmem:[#allocation5 + $0x18] sm:$0xff]  ;;  %vm96_vm0 = vcmask 523264   ;;  %v76_v50 = vlaneseq }
  0x28   :  { %164 = vmatprep.mubr.f32.mxu0 %v413_v0  ;;  %235 = vmatprep.mubr.f32.mxu1 %v413_v0  ;;  %v47_v2 = vld [vmem:[#allocation5 + $0x28] sm:$0xff]  ;;  %v49_v5 = vld [vmem:[#allocation5 + $0x38] sm:$0xff]  ;;  %v42_v6 = vld [vmem:[#allocation5] sm:$0xff]  ;;  %v414_v57 = vmov 1966171168  }
  0x29   :  { %v298_v4 = vpack.c.bf16 %v47_v2, %v43_v1  ;;  %v46_v7 = vld [vmem:[#allocation5 + $0x20] sm:$0xff]  ;;  %v314_v8 = vpack.c.bf16 %v49_v5, %v45_v3  ;;  %v44_v10 = vld [vmem:[#allocation5 + $0x10] sm:$0xff]  ;;  %v51_v12 = vld [vmem:[#allocation5 + $0x48] sm:$0xff]  ;;  %v77_v51 = vshrl.u32 %v76_v50, 7  ;;  %v253_v58 = vunpack.c.l.s4 %v414_v57 }
  0x2a   :  { %v300_v9 = vpack.c.bf16 %v46_v7, %v42_v6  ;;  %v48_v11 = vld [vmem:[#allocation5 + $0x30] sm:$0xff]  ;;  %v55_v14 = vld [vmem:[#allocation5 + $0x68] sm:$0xff]  ;;  %v53_v15 = vld [vmem:[#allocation5 + $0x58] sm:$0xff]  ;;  %vm277_vm1 = vcmp.lt.s32.totalorder %v76_v50, 512 }
  0x2b   :  { %299 = vmatprep.subr.bf16.mxu0 %v298_v4  ;;  %v316_v13 = vpack.c.bf16 %v48_v11, %v44_v10  ;;  %v57_v16 = vld [vmem:[#allocation5 + $0x78] sm:$0xff]  ;;  %315 = vmatprep.subr.bf16.mxu1 %v314_v8  ;;  %v302_v17 = vpack.c.bf16 %v55_v14, %v51_v12  ;;  %v50_v19 = vld [vmem:[#allocation5 + $0x40] sm:$0xff]  ;;  %v52_v21 = vld [vmem:[#allocation5 + $0x50] sm:$0xff]  ;;  %v78_v52 = vsub.s32 0, %v77_v51  ;;  %v86_v54 = vsub.s32 2, %v77_v51 }
  0x2c   :  { %301 = vmatpush1.bf16.msra.mxu0 %v300_v9  ;;  %v318_v18 = vpack.c.bf16 %v57_v16, %v53_v15  ;;  %v54_v20 = vld [vmem:[#allocation5 + $0x60] sm:$0xff]  ;;  %v56_v23 = vld [vmem:[#allocation5 + $0x70] sm:$0xff]  ;;  %v59_v24 = vld [vmem:[#allocation5 + $0x88] sm:$0xff]  ;;  %v82_v55 = vsub.s32 1, %v77_v51  ;;  %v90_v56 = vsub.s32 3, %v77_v51  ;;  %v254_v0 = vunpack.c.0.s8 %v253_v58 }
  0x2d   :  { %317 = vmatpush1.bf16.msra.mxu1 %v316_v13  ;;  %v304_v22 = vpack.c.bf16 %v54_v20, %v50_v19  ;;  %v63_v25 = vld [vmem:[#allocation5 + $0xa8] sm:$0xff]  ;;  %303 = vmatprep.subr.bf16.mxu0 %v302_v17  ;;  %v320_v26 = vpack.c.bf16 %v56_v23, %v52_v21  ;;  %v61_v28 = vld [vmem:[#allocation5 + $0x98] sm:$0xff]  ;;  %v58_v30 = vld [vmem:[#allocation5 + $0x80] sm:$0xff] }
  0x2e   :  { %319 = vmatprep.subr.bf16.mxu1 %v318_v18  ;;  %v306_v27 = vpack.c.bf16 %v63_v25, %v59_v24  ;;  %v65_v29 = vld [vmem:[#allocation5 + $0xb8] sm:$0xff]  ;;  %v62_v32 = vld [vmem:[#allocation5 + $0xa0] sm:$0xff]  ;;  %v60_v33 = vld [vmem:[#allocation5 + $0x90] sm:$0xff]  ;;  %v257_v11 = vsub.s32 %v254_v0, %v77_v51 }
  0x2f   :  { %v322_v31 = vpack.c.bf16 %v65_v29, %v61_v28  ;;  %v64_v34 = vld [vmem:[#allocation5 + $0xb0] sm:$0xff]  ;;  %v308_v35 = vpack.c.bf16 %v62_v32, %v58_v30  ;;  %v67_v36 = vld [vmem:[#allocation5 + $0xc8] sm:$0xff]  ;;  %v69_v38 = vld [vmem:[#allocation5 + $0xd8] sm:$0xff] }
  0x30   :  { %305 = vmatpush1.bf16.msra.mxu0 %v304_v22  ;;  %v71_v37 = vld [vmem:[#allocation5 + $0xe8] sm:$0xff]  ;;  %v324_v39 = vpack.c.bf16 %v64_v34, %v60_v33  ;;  %v73_v41 = vld [vmem:[#allocation5 + $0xf8] sm:$0xff]  ;;  %v66_v42 = vld [vmem:[#allocation5 + $0xc0] sm:$0xff] }
  0x31   :  { %321 = vmatpush1.bf16.msra.mxu1 %v320_v26  ;;  %307 = vmatprep.subr.bf16.mxu0 %v306_v27  ;;  %v310_v40 = vpack.c.bf16 %v71_v37, %v67_v36  ;;  %v70_v43 = vld [vmem:[#allocation5 + $0xe0] sm:$0xff]  ;;  %v326_v44 = vpack.c.bf16 %v73_v41, %v69_v38  ;;  %v68_v45 = vld [vmem:[#allocation5 + $0xd0] sm:$0xff]  ;;  %v41_v49 = vld [vmem:[#allocation2] sm:$0x1] }
  0x32   :  { %323 = vmatprep.subr.bf16.mxu1 %v322_v31  ;;  %v72_v46 = vld [vmem:[#allocation5 + $0xf0] sm:$0xff]  ;;  %v312_v47 = vpack.c.bf16 %v70_v43, %v66_v42 }
  0x33   :  { %v328_v48 = vpack.c.bf16 %v72_v46, %v68_v45  ;;  %v74_v53 = vld [vmem:[%s484_s2] sm:$0xf]  ;;  %s415_s2 = smov [#allocation7]  }
  0x34   :  { %309 = vmatpush1.bf16.msra.mxu0 %v308_v35  ;;  %v79_v59 = vrot.slane %v74_v53, %v78_v52  ;;  %v87_v60 = vrot.slane %v74_v53, %v86_v54  ;;  %v83_v61 = vrot.slane %v74_v53, %v82_v55  ;;  %v91_v62 = vrot.slane %v74_v53, %v90_v56  ;;  %s286_s12 = sshll.u32 %s415_s2, 4  ;;  %s287_s12 = int_to_ptr.vmem [resolvable:$true] %s286_s12 }
  0x35   :  { %325 = vmatpush1.bf16.msra.mxu1 %v324_v39  ;;  %311 = vmatprep.subr.bf16.mxu0 %v310_v40  ;;  %s381_s13 = scalar_lea.vmem %s287_s12, 64  ;;  %p386_p3 = scmp.lt.s32.totalorder %s287_s12, %s287_s12 }
  0x36   :  { %327 = vmatprep.subr.bf16.mxu1 %v326_v44  ;;  %p382_p2 = scmp.ne.s32.totalorder %s287_s12, %s381_s13  ;;  %p387_p4 = scmp.lt.s32.totalorder %s381_s13, %s381_s13 }
  0x38   :  { %313 = vmatpush1.bf16.msra.mxu0 %v312_v47  ;;  %p388_p5 = por %p387_p4, %p386_p3 }
  0x39   :  { %329 = vmatpush1.bf16.msra.mxu1 %v328_v48 }
  0x3a   :  { %p389_p6 = pnand %p388_p5, %p382_p2 }
  0x3b   :  { %296 = vmatmul.mubr.msk.f32.vlgmr.msra.gmra.mrb[0].mxu0 %vm96_vm0, %v41_v49 }
  0x3c   :  { %297 = vmatmul.mubr.msk.f32.vlgmr.msra.gmra.mrb[0].mxu1 %vm96_vm0, %v41_v49 }
 0x10e   :  { %v166_v63 = vpop.f32.mrb[0].mxu0 }
 0x10f   :  { %v167_v1 = vadd.f32 %v166_v63, %v79_v59  ;;  %v237_v2 = vpop.f32.mrb[0].mxu1  ;;  %v168_v3 = vpop.f32.mrb[1].mxu0 }
 0x110   :  { %v238_v4 = vadd.f32 %v237_v2, %v87_v60  ;;  %v169_v5 = vadd.f32 %v168_v3, %v83_v61  ;;  %v239_v6 = vpop.f32.mrb[1].mxu1 }
 0x111   :  { %v242_v7 = vmax.f32 %v167_v1, 0.0  ;;  %v240_v8 = vadd.f32 %v239_v6, %v91_v62 }
 0x112   :  { %v244_v9 = vmax.f32 %v238_v4, 0.0  ;;  %v243_v10 = vmax.f32 %v169_v5, 0.0 }
 0x113   :  { %v245_v12 = vmax.f32 %v240_v8, 0.0 }
 0x114   :  { %v250_v13 = vcombine.low %v242_v7, %v243_v10 }
 0x115   :  { %v251_v14 = vcombine.low %v244_v9, %v245_v12 }
 0x116   :  { %v258_v15 = vrot.slane %v250_v13, %v257_v11 }
 0x117   :  { %v265_v16 = vrot.slane %v251_v14, %v257_v11 }
 0x119   :  { %v266_v17 = vcombine.low %v258_v15, %v265_v16 }
 0x11b   :  { %v273_v18 = vrot.slane %v266_v17, %v257_v11 }
 0x11d   :  { %279 = vst.msk [vmem:[#allocation7] sm:$0xf] %vm277_vm1, %v273_v18 }
 0x11e   :  { %392 = shalt.err (!%p389_p6)
}
 0x11f   :  { %s393_s16 = scalar_lea.hbm %s485_s3, 64 }
 0x120   :  { %p394_p7 = scmp.ne.s32.totalorder %s485_s3, %s393_s16  ;;  %p397_p8 = scmp.lt.u32.totalorder %s393_s16, %s485_s3 }
 0x122   :  { %p399_p9 = pnand %p397_p8, %p394_p7 }
 0x124   :  { %402 = shalt.err (!%p399_p9)
}
 0x125   :  { %289 = dma.vmem_to_hbm [thread:$0]  %s287_s12, 64, %s485_s3, [#allocation4]  }
 0x126   :  { %407 = dma.done.wait [#allocation4], 64  }
 0x127   :  { %408 = vsyncadd [#allocation4], 4294967232 }
 0x128   :  { %293 = vsyncpa [#allocation3], 1 }
 0x129   :  { %294 = vsyncpa [#allocation6], 1 }
 0x12a   :  { %295 = vsyncpa [#allocation4], 1 }

</bundles_post_ra>
